<compile_context>
chip_gen: v5e
topology: v5e:2x2
jax: 0.10.0
libtpu: 0.0.40
codegen_flags: <defaults>
</compile_context>

<pallas_src>
import math
from functools import partial

import jax
import jax.numpy as jnp
from jax.experimental import pallas as pl
from jax.experimental.pallas import tpu as pltpu

_LANE = 128


def _round_up(x, m):
    return (x + m - 1) // m * m


def _pick_tile(dim_pad, pref):
    """Largest multiple of 128 that divides dim_pad and is <= pref."""
    best = _LANE
    t = _LANE
    limit = min(pref, dim_pad)
    while t <= limit:
        if dim_pad % t == 0:
            best = t
        t += _LANE
    return best


def _tile_prefs():
    """Generation-aware (tm, tn, tk, vmem_limit_bytes) preferences."""
    try:
        vmem_cap = pltpu.get_tpu_info().vmem_capacity_bytes
    except Exception:
        vmem_cap = 64 * 1024 * 1024  # conservative fallback (v7x-sized)
    if vmem_cap >= 100 * 1024 * 1024:
        # v5e / v6e (128 MiB VMEM): big output tile to clear the v6e ridge.
        return 1024, 2048, 512, 96 * 1024 * 1024
    # v7x (64 MiB VMEM per TC): compute-bound tile that keeps ~10 MiB usage.
    return 512, 1024, 512, 48 * 1024 * 1024


def _dense_kernel_f32(x_ref, w_ref, *rest, use_bias, activation):
    """f32 output: accumulate directly into the resident output block."""
    if use_bias:
        b_ref, o_ref = rest
    else:
        (o_ref,) = rest
    k = pl.program_id(2)

    @pl.when(k == 0)
    def _():
        o_ref[...] = jnp.zeros_like(o_ref)

    o_ref[...] += jnp.dot(x_ref[...], w_ref[...],
                          preferred_element_type=jnp.float32)

    if use_bias or activation is not None:
        @pl.when(k == pl.num_programs(2) - 1)
        def _():
            y = o_ref[...]
            if use_bias:
                y = y + b_ref[...]          # (1, tn) f32, broadcasts over rows
            if activation is not None:
                y = activation(y)
            o_ref[...] = y


def _dense_kernel_acc(x_ref, w_ref, *rest, use_bias, activation):
    """Narrow output dtype: accumulate in an f32 scratch, cast on last K step."""
    if use_bias:
        b_ref, o_ref, acc_ref = rest
    else:
        o_ref, acc_ref = rest
    k = pl.program_id(2)

    @pl.when(k == 0)
    def _():
        acc_ref[...] = jnp.zeros_like(acc_ref)

    acc_ref[...] += jnp.dot(x_ref[...], w_ref[...],
                            preferred_element_type=jnp.float32)

    @pl.when(k == pl.num_programs(2) - 1)
    def _():
        y = acc_ref[...]
        if use_bias:
            y = y + b_ref[...]
        if activation is not None:
            y = activation(y)
        o_ref[...] = y.astype(o_ref.dtype)


def make_dense(W, b=None, *, use_bias=True, activation=None,
               tm=None, tn=None, tk=None,
               compute_dtype=jnp.bfloat16, out_dtype=jnp.float32,
               vmem_limit_bytes=None):
    """Build a forward(x) closure; weights/bias are pre-cast/padded once."""
    fan_in, fan_out = W.shape
    tm_pref, tn_pref, tk_pref, vmem_default = _tile_prefs()
    tm = tm_pref if tm is None else tm
    tn = tn_pref if tn is None else tn
    tk = tk_pref if tk is None else tk
    vmem_limit = vmem_default if vmem_limit_bytes is None else vmem_limit_bytes

    K_pad = _round_up(fan_in, _LANE)
    N_pad = _round_up(fan_out, _LANE)
    tk_ = _pick_tile(K_pad, tk)
    tn0 = _pick_tile(N_pad, tn)

    # Pre-cast / pre-pad weights and bias ONCE (out of the per-call hot path).
    w_p = W.astype(compute_dtype)
    if (K_pad, N_pad) != (fan_in, fan_out):
        w_p = jnp.pad(w_p, ((0, K_pad - fan_in), (0, N_pad - fan_out)))
    if use_bias:
        b_arr = jnp.zeros((fan_out,), dtype=jnp.float32) if b is None else b
        b_p = b_arr.astype(jnp.float32)
        if N_pad != fan_out:
            b_p = jnp.pad(b_p, (0, N_pad - fan_out))
        b_p = b_p.reshape(1, N_pad)
    else:
        b_p = None

    direct_f32 = jnp.dtype(out_dtype) == jnp.dtype(jnp.float32)
    in_bytes = jnp.dtype(compute_dtype).itemsize
    out_bytes = jnp.dtype(out_dtype).itemsize

    def forward(x):
        x_shape = x.shape
        assert x_shape[-1] == fan_in, (x_shape[-1], fan_in)
        x_r = x.reshape(-1, fan_in)
        M = x_r.shape[0]
        M_pad = _round_up(M, _LANE)
        tm_ = _pick_tile(M_pad, tm)

        # Megacore: if both parallel axes would have a single block, split N
        # so the two TensorCores (v7x) both get work.
        tn_ = tn0
        if M_pad // tm_ == 1 and N_pad // tn_ == 1 and tn_ % 256 == 0:
            tn_ = tn_ // 2

        # Single cast (+ pad only if needed) pass over x.
        x_p = x_r.astype(compute_dtype)
        if (M_pad, K_pad) != (M, fan_in):
            x_p = jnp.pad(x_p, ((0, M_pad - M), (0, K_pad - fan_in)))

        grid = (M_pad // tm_, N_pad // tn_, K_pad // tk_)

        in_specs = [
            pl.BlockSpec((tm_, tk_), lambda i, j, k: (i, k)),
            pl.BlockSpec((tk_, tn_), lambda i, j, k: (k, j)),
        ]
        operands = [x_p, w_p]
        if use_bias:
            in_specs.append(pl.BlockSpec((1, tn_), lambda i, j, k: (0, j)))
            operands.append(b_p)

        if direct_f32:
            kernel = partial(_dense_kernel_f32, use_bias=use_bias,
                             activation=activation)
            scratch_shapes = []
        else:
            kernel = partial(_dense_kernel_acc, use_bias=use_bias,
                             activation=activation)
            scratch_shapes = [pltpu.VMEM((tm_, tn_), jnp.float32)]

        bytes_accessed = (
            M_pad * K_pad * in_bytes * (N_pad // tn_)    # x re-streamed per N tile
            + K_pad * N_pad * in_bytes * (M_pad // tm_)  # W re-streamed per M tile
            + M_pad * N_pad * out_bytes
            + (N_pad * 4 if use_bias else 0)
        )

        y = pl.pallas_call(
            kernel,
            out_shape=jax.ShapeDtypeStruct((M_pad, N_pad), out_dtype),
            grid_spec=pltpu.PrefetchScalarGridSpec(
                num_scalar_prefetch=0,
                grid=grid,
                in_specs=in_specs,
                out_specs=pl.BlockSpec((tm_, tn_), lambda i, j, k: (i, j)),
                scratch_shapes=scratch_shapes,
            ),
            compiler_params=pltpu.CompilerParams(
                dimension_semantics=("parallel", "parallel", "arbitrary"),
                vmem_limit_bytes=vmem_limit,
            ),
            cost_estimate=pl.CostEstimate(
                flops=2 * M_pad * K_pad * N_pad,
                transcendentals=0,
                bytes_accessed=int(bytes_accessed),
            ),
        )(*operands)

        y = y[:M, :fan_out]
        # Same final reshape as the PyTorch module: (x_shape[0], fan_out).
        # (Like the spec, this is only valid for 2-D inputs.)
        return y.reshape((x_shape[0], fan_out))

    return forward


def dense_forward(x, W, b=None, **kwargs):
    """Convenience one-shot wrapper (builds the prepared closure each call)."""
    return make_dense(W, b, **kwargs)(x)


def glorot_uniform(key, fan_in, fan_out, dtype=jnp.float32):
    limit = math.sqrt(6.0 / (fan_in + fan_out))
    return jax.random.uniform(key, (fan_in, fan_out), dtype=dtype,
                              minval=-limit, maxval=limit)


def _reference(x, W, b, *, use_bias=True, activation=None):
    # Reference with the same bf16 operand rounding + f32 accumulation.
    xr = x.astype(jnp.bfloat16).astype(jnp.float32).reshape(-1, x.shape[-1])
    Wr = W.astype(jnp.bfloat16).astype(jnp.float32)
    y = xr @ Wr
    if use_bias:
        y = y + b.astype(jnp.float32)
    if activation is not None:
        y = activation(y)
    return y.reshape(x.shape[0], W.shape[1])


if __name__ == "__main__":
    key = jax.random.PRNGKey(0)

    # --- small shape matching the module's typical use (single tile) ---
    k1, k2 = jax.random.split(key)
    batch, fan_in, fan_out = 8, 32, 32
    x = jax.random.normal(k1, (batch, fan_in), dtype=jnp.float32)
    W = glorot_uniform(k2, fan_in, fan_out)
    b = jnp.zeros((fan_out,), dtype=jnp.float32)

    dense_small = make_dense(W, b, use_bias=True, activation=None)
    y = dense_small(x)
    jax.block_until_ready(y)
    y_ref = _reference(x, W, b, use_bias=True, activation=None)
    assert y.shape == (batch, fan_out)
    assert jnp.allclose(y, y_ref, atol=1e-3, rtol=1e-3)

    # --- larger shape exercising the multi-step K reduction + activation ---
    k3, k4 = jax.random.split(k2)
    M2, K2, N2 = 512, 640, 384
    x2 = jax.random.normal(k3, (M2, K2), dtype=jnp.float32)
    W2 = glorot_uniform(k4, K2, N2)
    b2 = 0.1 * jnp.ones((N2,), dtype=jnp.float32)

    dense_big = make_dense(W2, b2, use_bias=True, activation=jax.nn.relu)
    y2 = dense_big(x2)
    jax.block_until_ready(y2)
    y2_ref = _reference(x2, W2, b2, use_bias=True, activation=jax.nn.relu)
    assert y2.shape == (M2, N2)
    assert jnp.allclose(y2, y2_ref, atol=2e-3, rtol=2e-3)

    # --- no-bias path (bias operand dropped entirely) + bf16 output path ---
    y3 = dense_forward(x2, W2, None, use_bias=False, activation=None)
    jax.block_until_ready(y3)
    y3_ref = _reference(x2, W2, b2, use_bias=False, activation=None)
    assert jnp.allclose(y3, y3_ref, atol=2e-3, rtol=2e-3)

    y4 = dense_forward(x2, W2, b2, use_bias=True, activation=None,
                       out_dtype=jnp.bfloat16)
    jax.block_until_ready(y4)
    assert y4.dtype == jnp.bfloat16
    assert jnp.allclose(y4.astype(jnp.float32),
                        _reference(x2, W2, b2, use_bias=True, activation=None),
                        atol=3e-2, rtol=3e-2)

    print("KERNEL_OK")
</pallas_src>

<mosaic_0001>
module attributes {stable_mosaic.version = 11 : i64} {
  func.func @_dense_kernel_f32(%arg0: i32, %arg1: i32, %arg2: i32, %arg3: memref<128x128xbf16, #tpu.memory_space<vmem>>, %arg4: memref<128x128xbf16, #tpu.memory_space<vmem>>, %arg5: memref<1x128xf32, #tpu.memory_space<vmem>>, %arg6: memref<128x128xf32, #tpu.memory_space<vmem>>) attributes {dimension_semantics = [#tpu.dimension_semantics<parallel>, #tpu.dimension_semantics<parallel>, #tpu.dimension_semantics<arbitrary>], iteration_bounds = array<i64: 1, 1, 1>, scalar_prefetch = 0 : i64, scratch_operands = 0 : i64, tpu.core_type = #tpu.core_type<tc>, window_params = [{transform_indices = @transform_0, window_bounds = array<i64: 128, 128>}, {transform_indices = @transform_1, window_bounds = array<i64: 128, 128>}, {transform_indices = @transform_2, window_bounds = array<i64: 1, 128>}, {transform_indices = @transform_3, window_bounds = array<i64: 128, 128>}]} {
    %c0_i32 = arith.constant 0 : i32
    %0 = arith.cmpi eq, %arg2, %c0_i32 : i32
    %1 = arith.extui %0 : i1 to i32
    %c0_i32_0 = arith.constant 0 : i32
    %2 = arith.cmpi ne, %1, %c0_i32_0 : i32
    scf.if %2 {
      %cst_10 = arith.constant 0.000000e+00 : f32
      %12 = vector.broadcast %cst_10 : f32 to vector<128x128xf32>
      %c0_11 = arith.constant 0 : index
      %c0_12 = arith.constant 0 : index
      %13 = vector.load %arg6[%c0_11, %c0_12] : memref<128x128xf32, #tpu.memory_space<vmem>>, vector<128x128xf32>
      tpu.vector_store %arg6[%c0_11, %c0_12], %12 {strides = array<i32>} : memref<128x128xf32, #tpu.memory_space<vmem>>, vector<128x128xf32>,
    } else {
    }
    %c0 = arith.constant 0 : index
    %c0_1 = arith.constant 0 : index
    %3 = vector.load %arg6[%c0, %c0_1] : memref<128x128xf32, #tpu.memory_space<vmem>>, vector<128x128xf32>
    %c0_2 = arith.constant 0 : index
    %c0_3 = arith.constant 0 : index
    %4 = vector.load %arg3[%c0_2, %c0_3] : memref<128x128xbf16, #tpu.memory_space<vmem>>, vector<128x128xbf16>
    %c0_4 = arith.constant 0 : index
    %c0_5 = arith.constant 0 : index
    %5 = vector.load %arg4[%c0_4, %c0_5] : memref<128x128xbf16, #tpu.memory_space<vmem>>, vector<128x128xbf16>
    %cst = arith.constant dense<0.000000e+00> : vector<128x128xf32>
    %6 = tpu.matmul %4, %5, %cst {dimension_numbers = #tpu.dot_dimension_numbers<[1], [0], [0], [1], [0, 0, 1, 1], [], []>} : vector<128x128xbf16>, vector<128x128xbf16>, vector<128x128xf32> -> vector<128x128xf32>
    %7 = arith.addf %3, %6 : vector<128x128xf32>
    %c0_6 = arith.constant 0 : index
    %c0_7 = arith.constant 0 : index
    %8 = vector.load %arg6[%c0_6, %c0_7] : memref<128x128xf32, #tpu.memory_space<vmem>>, vector<128x128xf32>
    tpu.vector_store %arg6[%c0_6, %c0_7], %7 {strides = array<i32>} : memref<128x128xf32, #tpu.memory_space<vmem>>, vector<128x128xf32>,
    %c0_i32_8 = arith.constant 0 : i32
    %9 = arith.cmpi eq, %arg2, %c0_i32_8 : i32
    %10 = arith.extui %9 : i1 to i32
    %c0_i32_9 = arith.constant 0 : i32
    %11 = arith.cmpi ne, %10, %c0_i32_9 : i32
    scf.if %11 {
      %c0_10 = arith.constant 0 : index
      %c0_11 = arith.constant 0 : index
      %12 = vector.load %arg6[%c0_10, %c0_11] : memref<128x128xf32, #tpu.memory_space<vmem>>, vector<128x128xf32>
      %c0_12 = arith.constant 0 : index
      %c0_13 = arith.constant 0 : index
      %13 = vector.load %arg5[%c0_12, %c0_13] : memref<1x128xf32, #tpu.memory_space<vmem>>, vector<1x128xf32>
      %14 = vector.broadcast %13 : vector<1x128xf32> to vector<128x128xf32>
      %15 = arith.addf %12, %14 : vector<128x128xf32>
      %c0_14 = arith.constant 0 : index
      %c0_15 = arith.constant 0 : index
      %16 = vector.load %arg6[%c0_14, %c0_15] : memref<128x128xf32, #tpu.memory_space<vmem>>, vector<128x128xf32>
      tpu.vector_store %arg6[%c0_14, %c0_15], %15 {strides = array<i32>} : memref<128x128xf32, #tpu.memory_space<vmem>>, vector<128x128xf32>,
    } else {
    }
    return
  }
  func.func @transform_0(%arg0: i32, %arg1: i32, %arg2: i32) -> (i32, i32) {
    %c0_i32 = arith.constant 0 : i32
    return %arg0, %arg2 : i32, i32
  }
  func.func @transform_1(%arg0: i32, %arg1: i32, %arg2: i32) -> (i32, i32) {
    %c0_i32 = arith.constant 0 : i32
    return %arg2, %arg1 : i32, i32
  }
  func.func @transform_2(%arg0: i32, %arg1: i32, %arg2: i32) -> (i32, i32) {
    %c0_i32 = arith.constant 0 : i32
    %c0_i32_0 = arith.constant 0 : i32
    return %c0_i32, %arg1 : i32, i32
  }
  func.func @transform_3(%arg0: i32, %arg1: i32, %arg2: i32) -> (i32, i32) {
    %c0_i32 = arith.constant 0 : i32
    return %arg0, %arg1 : i32, i32
  }
}

</mosaic_0001>

<bundles_post_ra>
// kernel: tpu_custom_call.1
= control target key start
LH: loop header
LB: loop body
LE: loop exit
PB: predicated region body
PF: predicated region fallthrough
CT: control target
= control target key end

     0   :  { %8 = vsyncpa [#allocation3], 0  ;;  %s597_s0 = inlined_call_operand.hbm [shape: bf16[128,128], index: 0, kind: input, shape index: {}]   ;;  %s598_s1 = inlined_call_operand.hbm [shape: bf16[128,128], index: 1, kind: input, shape index: {}]   ;;  %s599_s2 = inlined_call_operand.vmem [shape: f32[1,128], index: 2, kind: input, shape index: {}]   ;;  %s600_s3 = inlined_call_operand.hbm [shape: f32[128,128], index: 3, kind: output, shape index: {}]  }
   0x1   :  { %9 = vsyncpa [#allocation6], 0 }
   0x2   :  { %10 = vsyncpa [#allocation4], 0  ;;  %s15_s14 = sshll.u32 %s597_s0, 4  ;;  %s558_s15 = smov [#allocation2]   ;;  %s16_s14 = int_to_ptr.hbm [resolvable:$true] %s15_s14 }
   0x3   :  { %s17_s16 = sshll.u32 %s558_s15, 4  ;;  %s28_s19 = sshll.u32 %s598_s1, 4  ;;  %s18_s16 = int_to_ptr.vmem [resolvable:$true] %s17_s16  ;;  %s29_s19 = int_to_ptr.hbm [resolvable:$true] %s28_s19 }
   0x4   :  { %s559_s20 = smov 64   ;;  %s560_s21 = smov 4  }
   0x5   :  { %23 = dma.hbm_to_vmem [thread:$0]  %s16_s14, 1024, %s18_s16, [#allocation3], %s559_s20, %s559_s20, %s560_s21  }
   0x6   :  { %s561_s22 = smov [#allocation5]  }
   0x7   :  { %s30_s23 = sshll.u32 %s561_s22, 4  ;;  %s31_s23 = int_to_ptr.vmem [resolvable:$true] %s30_s23 }
   0x8   :  { %36 = dma.hbm_to_vmem [thread:$0]  %s29_s19, 1024, %s31_s23, [#allocation6], %s559_s20, %s559_s20, %s560_s21  }
   0x9   :  { %552 = dma.done.wait [#allocation3], 1024  }
   0xa   :  { %553 = vsyncadd [#allocation3], 4294966272 }
   0xb   :  { %554 = dma.done.wait [#allocation6], 1024  }
   0xc   :  { %555 = vsyncadd [#allocation6], 4294966272  ;;  %v446_v0 = vld [vmem:[#allocation5 + $0x38] sm:$0xff]  ;;  %v445_v1 = vld [vmem:[#allocation5 + $0x30] sm:$0xff]  ;;  %s353_s27 = sshll.u32 %s600_s3, 4  ;;  %s563_s28 = smov 128   ;;  %s354_s27 = int_to_ptr.hbm [resolvable:$true] %s353_s27 }
   0xd   :  { %211 = vmatpush.bf16.msra.mxu0 %v446_v0  ;;  %447 = vmatpush.bf16.msra.mxu1 %v446_v0  ;;  %v444_v2 = vld [vmem:[#allocation5 + $0x28] sm:$0xff]  ;;  %v443_v3 = vld [vmem:[#allocation5 + $0x20] sm:$0xff]  ;;  %v442_v4 = vld [vmem:[#allocation5 + $0x18] sm:$0xff]  ;;  %s564_s29 = smov 8  }
   0xe   :  { %448 = vmatpush.bf16.msra.mxu2 %v446_v0  ;;  %449 = vmatpush.bf16.msra.mxu3 %v446_v0  ;;  %v441_v5 = vld [vmem:[#allocation5 + $0x10] sm:$0xff]  ;;  %v440_v6 = vld [vmem:[#allocation5 + $0x8] sm:$0xff]  ;;  %v439_v7 = vld [vmem:[#allocation5] sm:$0xff] }
   0xf   :  { %v431_v8 = vld [vmem:[#allocation2] sm:$0xff]  ;;  %v433_v9 = vld [vmem:[#allocation2 + $0x10] sm:$0xff]  ;;  %v432_v12 = vld [vmem:[#allocation2 + $0x8] sm:$0xff] }
  0x10   :  { %v435_v10 = vld [vmem:[#allocation2 + $0x20] sm:$0xff]  ;;  %v437_v11 = vld [vmem:[#allocation2 + $0x30] sm:$0xff]  ;;  %v434_v13 = vld [vmem:[#allocation2 + $0x18] sm:$0xff] }
  0x11   :  { %212 = vmatpush.bf16.msra.mxu0 %v445_v1  ;;  %450 = vmatpush.bf16.msra.mxu1 %v445_v1  ;;  %v436_v14 = vld [vmem:[#allocation2 + $0x28] sm:$0xff]  ;;  %v438_v15 = vld [vmem:[#allocation2 + $0x38] sm:$0xff]  ;;  %v479_v16 = vld [vmem:[%s599_s2] ss:$0 sm:$0xff]  ;;  %s562_s2 = smov [#allocation7]  }
  0x12   :  { %451 = vmatpush.bf16.msra.mxu2 %v445_v1  ;;  %452 = vmatpush.bf16.msra.mxu3 %v445_v1  ;;  %s351_s24 = sshll.u32 %s562_s2, 4  ;;  %s352_s24 = int_to_ptr.vmem [resolvable:$true] %s351_s24 }
  0x15   :  { %213 = vmatpush.bf16.msra.mxu0 %v444_v2  ;;  %453 = vmatpush.bf16.msra.mxu1 %v444_v2 }
  0x16   :  { %454 = vmatpush.bf16.msra.mxu2 %v444_v2  ;;  %455 = vmatpush.bf16.msra.mxu3 %v444_v2 }
  0x19   :  { %214 = vmatpush.bf16.msra.mxu0 %v443_v3  ;;  %456 = vmatpush.bf16.msra.mxu1 %v443_v3 }
  0x1a   :  { %457 = vmatpush.bf16.msra.mxu2 %v443_v3  ;;  %458 = vmatpush.bf16.msra.mxu3 %v443_v3 }
  0x1d   :  { %215 = vmatpush.bf16.msra.mxu0 %v442_v4  ;;  %459 = vmatpush.bf16.msra.mxu1 %v442_v4 }
  0x1e   :  { %460 = vmatpush.bf16.msra.mxu2 %v442_v4  ;;  %461 = vmatpush.bf16.msra.mxu3 %v442_v4 }
  0x21   :  { %216 = vmatpush.bf16.msra.mxu0 %v441_v5  ;;  %462 = vmatpush.bf16.msra.mxu1 %v441_v5 }
  0x22   :  { %463 = vmatpush.bf16.msra.mxu2 %v441_v5  ;;  %464 = vmatpush.bf16.msra.mxu3 %v441_v5 }
  0x25   :  { %217 = vmatpush.bf16.msra.mxu0 %v440_v6  ;;  %465 = vmatpush.bf16.msra.mxu1 %v440_v6 }
  0x26   :  { %466 = vmatpush.bf16.msra.mxu2 %v440_v6  ;;  %467 = vmatpush.bf16.msra.mxu3 %v440_v6 }
  0x29   :  { %218 = vmatpush.bf16.msra.mxu0 %v439_v7  ;;  %468 = vmatpush.bf16.msra.mxu1 %v439_v7 }
  0x2a   :  { %469 = vmatpush.bf16.msra.mxu2 %v439_v7  ;;  %470 = vmatpush.bf16.msra.mxu3 %v439_v7 }
  0x2c   :  { %219 = vmatmul.bf16.vlgmr.msra.gmra.mxu0 %v431_v8  ;;  %229 = vmatmul.bf16.vlgmr.msra.gmra.mxu1 %v433_v9 }
  0x2d   :  { %239 = vmatmul.bf16.vlgmr.msra.gmra.mxu2 %v435_v10  ;;  %249 = vmatmul.bf16.vlgmr.msra.gmra.mxu3 %v437_v11 }
  0x3c   :  { %224 = vmatmul.bf16.gmra.mxu0 %v432_v12  ;;  %234 = vmatmul.bf16.gmra.mxu1 %v434_v13 }
  0x3d   :  { %244 = vmatmul.bf16.gmra.mxu2 %v436_v14  ;;  %254 = vmatmul.bf16.gmra.mxu3 %v438_v15 }
  0xa9   :  { %v220_v17 = vpop.f32.mrf.mxu0  ;;  %v230_v18 = vpop.f32.mrf.mxu1 }
  0xaa   :  { %v315_v19 = vadd.f32 %v479_v16, %v220_v17  ;;  %v319_v20 = vadd.f32 %v479_v16, %v230_v18 }
  0xac   :  { %331 = vst [vmem:[#allocation7] sm:$0xff] %v315_v19 }
  0xad   :  { %335 = vst [vmem:[#allocation7 + $0x20] sm:$0xff] %v319_v20 }
  0xb0   :  { %v240_v21 = vpop.f32.mrf.mxu2  ;;  %v250_v22 = vpop.f32.mrf.mxu3 }
  0xb1   :  { %v222_v23 = vpop.f32.mrf.mxu0  ;;  %v232_v24 = vpop.f32.mrf.mxu1  ;;  %v323_v25 = vadd.f32 %v479_v16, %v240_v21  ;;  %v327_v26 = vadd.f32 %v479_v16, %v250_v22 }
  0xb2   :  { %v316_v27 = vadd.f32 %v479_v16, %v222_v23  ;;  %v320_v28 = vadd.f32 %v479_v16, %v232_v24 }
  0xb3   :  { %339 = vst [vmem:[#allocation7 + $0x40] sm:$0xff] %v323_v25 }
  0xb4   :  { %343 = vst [vmem:[#allocation7 + $0x60] sm:$0xff] %v327_v26 }
  0xb5   :  { %332 = vst [vmem:[#allocation7 + $0x8] sm:$0xff] %v316_v27 }
  0xb6   :  { %336 = vst [vmem:[#allocation7 + $0x28] sm:$0xff] %v320_v28 }
  0xb8   :  { %v242_v29 = vpop.f32.mrf.mxu2  ;;  %v252_v30 = vpop.f32.mrf.mxu3 }
  0xb9   :  { %v225_v31 = vpop.f32.mrf.mxu0  ;;  %v235_v32 = vpop.f32.mrf.mxu1  ;;  %v324_v33 = vadd.f32 %v479_v16, %v242_v29  ;;  %v328_v34 = vadd.f32 %v479_v16, %v252_v30 }
  0xba   :  { %v317_v35 = vadd.f32 %v479_v16, %v225_v31  ;;  %v321_v36 = vadd.f32 %v479_v16, %v235_v32 }
  0xbb   :  { %340 = vst [vmem:[#allocation7 + $0x48] sm:$0xff] %v324_v33 }
  0xbc   :  { %344 = vst [vmem:[#allocation7 + $0x68] sm:$0xff] %v328_v34 }
  0xbd   :  { %333 = vst [vmem:[#allocation7 + $0x10] sm:$0xff] %v317_v35 }
  0xbe   :  { %337 = vst [vmem:[#allocation7 + $0x30] sm:$0xff] %v321_v36 }
  0xc0   :  { %v245_v37 = vpop.f32.mrf.mxu2  ;;  %v255_v38 = vpop.f32.mrf.mxu3 }
  0xc1   :  { %v227_v39 = vpop.f32.mrf.mxu0  ;;  %v237_v40 = vpop.f32.mrf.mxu1  ;;  %v325_v41 = vadd.f32 %v479_v16, %v245_v37  ;;  %v329_v42 = vadd.f32 %v479_v16, %v255_v38 }
  0xc2   :  { %v318_v43 = vadd.f32 %v479_v16, %v227_v39  ;;  %v322_v44 = vadd.f32 %v479_v16, %v237_v40 }
  0xc3   :  { %341 = vst [vmem:[#allocation7 + $0x50] sm:$0xff] %v325_v41 }
  0xc4   :  { %345 = vst [vmem:[#allocation7 + $0x70] sm:$0xff] %v329_v42 }
  0xc5   :  { %334 = vst [vmem:[#allocation7 + $0x18] sm:$0xff] %v318_v43 }
  0xc6   :  { %338 = vst [vmem:[#allocation7 + $0x38] sm:$0xff] %v322_v44 }
  0xc8   :  { %v247_v45 = vpop.f32.mrf.mxu2  ;;  %v257_v46 = vpop.f32.mrf.mxu3 }
  0xc9   :  { %v326_v47 = vadd.f32 %v479_v16, %v247_v45  ;;  %v330_v48 = vadd.f32 %v479_v16, %v257_v46 }
  0xcb   :  { %342 = vst [vmem:[#allocation7 + $0x58] sm:$0xff] %v326_v47 }
  0xcc   :  { %346 = vst [vmem:[#allocation7 + $0x78] sm:$0xff] %v330_v48 }
  0xcd   :  { %359 = dma.vmem_to_hbm [thread:$0]  %s352_s24, 2048, %s354_s27, [#allocation4], %s563_s28, %s563_s28, %s564_s29  }
  0xce   :  { %556 = dma.done.wait [#allocation4], 2048  }
  0xcf   :  { %557 = vsyncadd [#allocation4], 4294965248 }
  0xd0   :  { %364 = vsyncpa [#allocation3], 1 }
  0xd1   :  { %365 = vsyncpa [#allocation6], 1 }
  0xd2   :  { %366 = vsyncpa [#allocation4], 1 }

</bundles_post_ra>
